<compile_context>
chip_gen: v7x
topology: tpu7x:2x2x1
jax: 0.10.0
libtpu: 0.0.40
codegen_flags: <defaults>
</compile_context>

<pallas_src>
import functools

import jax
import jax.numpy as jnp
from jax.experimental import pallas as pl
from jax.experimental.pallas import tpu as pltpu

_EPS = 1e-5
_LANES = 128
_SUBLANES = 8


def _device_defaults():
    """(target input bytes per step per input, default parallel slices)."""
    kind = ""
    try:
        kind = jax.devices()[0].device_kind.lower()
    except Exception:  # pragma: no cover - defensive
        pass
    two_tc = ("v7" in kind) or ("7x" in kind)
    if two_tc:
        return 4 << 20, 2          # v7x: 4 MiB/input/step, use both TCs
    if "v6" in kind:
        return 4 << 20, 1          # v6e: 4 MiB/input/step, single TC
    return 2 << 20, 1              # v5e / unknown: conservative


def _dice_partial_kernel(pre_ref, tar_ref, inter_ref, union_ref, acc_i, acc_u,
                         *, rows, block_rows, n_blk):
    k = pl.program_id(1)

    @pl.when(k == 0)
    def _init():
        acc_i[...] = jnp.zeros_like(acc_i)
        acc_u[...] = jnp.zeros_like(acc_u)

    # Global row-block index (may exceed the real range on the clamped,
    # fully-empty step of an odd split — then valid_rows <= 0 masks it all).
    gid = pl.program_id(0) * n_blk + k
    valid_rows = rows - gid * block_rows

    def _accumulate(p, t):
        # Strip-sum into (8, 128): sums over the untiled leading axis are
        # plain vreg adds (VPU), no XLU; scalar reduce is deferred to wrapper.
        p3 = p.reshape(-1, _SUBLANES, _LANES)
        t3 = t.reshape(-1, _SUBLANES, _LANES)
        acc_i[...] += jnp.sum(p3 * t3, axis=0)
        acc_u[...] += jnp.sum(p3, axis=0) + jnp.sum(t3, axis=0)

    @pl.when(valid_rows >= block_rows)       # interior block: no masking cost
    def _full():
        _accumulate(pre_ref[...].astype(jnp.float32),
                    tar_ref[...].astype(jnp.float32))

    @pl.when(valid_rows < block_rows)        # ragged boundary block: mask rows
    def _ragged():
        row = jax.lax.broadcasted_iota(jnp.int32, (block_rows, _LANES), 0)
        keep = row < valid_rows
        _accumulate(jnp.where(keep, pre_ref[...].astype(jnp.float32), 0.0),
                    jnp.where(keep, tar_ref[...].astype(jnp.float32), 0.0))

    @pl.when(k == pl.num_programs(1) - 1)
    def _finalize():
        inter_ref[...] = acc_i[...]
        union_ref[...] = acc_u[...]


@functools.partial(jax.jit, static_argnames=("block_rows", "n_par"))
def dice_loss(predict, target, *, block_rows=None, n_par=None):
    assert predict.shape == target.shape, "predict/target must have equal size"

    # Keep narrow float dtypes (HBM-bound kernel -> fewer bytes); ints/bools
    # are promoted once in the wrapper.
    pre = predict if jnp.issubdtype(predict.dtype, jnp.floating) \
        else predict.astype(jnp.float32)
    tar = target if jnp.issubdtype(target.dtype, jnp.floating) \
        else target.astype(jnp.float32)

    total = int(pre.size)
    flat_p = pre.reshape(-1)
    flat_t = tar.reshape(-1)

    rem = total % _LANES
    if rem:
        # TODO(synk): lane-unaligned totals still pay one pad copy (< 128
        # elements of padding, but jnp.pad rewrites the array); a fully
        # copy-free path here would need manual pl.ANY DMA of the ragged tail.
        padn = _LANES - rem
        flat_p = jnp.pad(flat_p, (0, padn))
        flat_t = jnp.pad(flat_t, (0, padn))

    rows = flat_p.size // _LANES
    p2d = flat_p.reshape(rows, _LANES)     # free reshape (row-major grouping)
    t2d = flat_t.reshape(rows, _LANES)

    tgt_bytes, default_par = _device_defaults()
    itemsize = max(p2d.dtype.itemsize, t2d.dtype.itemsize)

    if block_rows is None:
        block_rows = tgt_bytes // (_LANES * itemsize)
    # Multiple of 32 covers f32(8)/bf16(16)/int8(32) sublane tiles.
    block_rows = max(32, (int(block_rows) // 32) * 32)
    block_rows = min(block_rows, -(-rows // 32) * 32)

    n_row_blocks = -(-rows // block_rows)
    if n_par is None:
        n_par = default_par
    n_par = max(1, min(int(n_par), n_row_blocks))
    n_blk = -(-n_row_blocks // n_par)
    last_block = n_row_blocks - 1

    # Clamp keeps every DMA in-bounds; an over-range step (odd split) re-reads
    # the last block and is fully masked to zero inside the kernel.
    in_map = lambda p, k: (jnp.minimum(p * n_blk + k, last_block), 0)
    out_map = lambda p, k: (p, 0)

    in_block_bytes = block_rows * _LANES * (p2d.dtype.itemsize
                                            + t2d.dtype.itemsize)
    vmem_need = 2 * in_block_bytes                 # double-buffered inputs
    vmem_limit = int(max(min(2 * vmem_need + (8 << 20), 56 << 20), 16 << 20))

    cost = pl.CostEstimate(
        flops=3 * rows * _LANES,
        transcendentals=0,
        bytes_accessed=rows * _LANES * (p2d.dtype.itemsize
                                        + t2d.dtype.itemsize),
    )

    kernel = functools.partial(_dice_partial_kernel, rows=rows,
                               block_rows=block_rows, n_blk=n_blk)

    part_i, part_u = pl.pallas_call(
        kernel,
        out_shape=(
            jax.ShapeDtypeStruct((n_par * _SUBLANES, _LANES), jnp.float32),
            jax.ShapeDtypeStruct((n_par * _SUBLANES, _LANES), jnp.float32),
        ),
        grid_spec=pltpu.PrefetchScalarGridSpec(
            num_scalar_prefetch=0,
            grid=(n_par, n_blk),
            in_specs=[
                pl.BlockSpec((block_rows, _LANES), in_map),
                pl.BlockSpec((block_rows, _LANES), in_map),
            ],
            out_specs=[
                pl.BlockSpec((_SUBLANES, _LANES), out_map),
                pl.BlockSpec((_SUBLANES, _LANES), out_map),
            ],
            scratch_shapes=[
                pltpu.VMEM((_SUBLANES, _LANES), jnp.float32),
                pltpu.VMEM((_SUBLANES, _LANES), jnp.float32),
            ],
        ),
        compiler_params=pltpu.CompilerParams(
            dimension_semantics=("parallel", "arbitrary"),
            vmem_limit_bytes=vmem_limit),
        cost_estimate=cost,
    )(p2d, t2d)

    intersection = jnp.sum(part_i)
    union = jnp.sum(part_u)
    return 1.0 - (2.0 * intersection + _EPS) / (union + _EPS)


def dice_loss_ref(predict, target):
    num = predict.shape[0]
    pre = predict.astype(jnp.float32).reshape(num, -1)
    tar = target.astype(jnp.float32).reshape(num, -1)
    intersection = (pre * tar).sum(-1).sum()
    union = (pre + tar).sum(-1).sum()
    return 1.0 - (2.0 * intersection + _EPS) / (union + _EPS)


if __name__ == "__main__":
    key = jax.random.PRNGKey(0)

    def make_inputs(shape, k, pdtype=jnp.float32):
        k1, k2 = jax.random.split(k)
        predict = jax.random.uniform(k1, shape, dtype=jnp.float32).astype(pdtype)
        target = (jax.random.uniform(k2, shape) > 0.5).astype(jnp.float32)
        return predict, target

    cases = [
        ((2, 4, 16, 16), {}, jnp.float32, 1e-5),                       # aligned, copy-free
        ((2, 3, 17, 13), {}, jnp.float32, 1e-5),                       # lane-unaligned -> small pad path
        ((4, 4, 32, 32), {"block_rows": 32, "n_par": 2}, jnp.float32, 1e-5),  # multi-block + parallel axis
        ((2, 3, 32, 64), {"block_rows": 32, "n_par": 2}, jnp.float32, 1e-5),  # odd block count -> clamped step
        ((2, 4, 16, 16), {}, jnp.bfloat16, 1e-4),                      # narrow-dtype passthrough
    ]
    for shape, kwargs, pdtype, tol in cases:
        key, sub = jax.random.split(key)
        predict, target = make_inputs(shape, sub, pdtype)
        got = dice_loss(predict, target, **kwargs)
        jax.block_until_ready(got)
        want = dice_loss_ref(predict, target)
        assert jnp.allclose(got, want, atol=tol, rtol=tol), (shape, got, want)

    print("KERNEL_OK")
</pallas_src>

<mosaic_0001>
module attributes {stable_mosaic.version = 11 : i64} {
  func.func @_dice_partial_kernel(%arg0: i32, %arg1: i32, %arg2: memref<32x128xf32, #tpu.memory_space<vmem>>, %arg3: memref<32x128xf32, #tpu.memory_space<vmem>>, %arg4: memref<8x128xf32, #tpu.memory_space<vmem>>, %arg5: memref<8x128xf32, #tpu.memory_space<vmem>>, %arg6: memref<8x128xf32, #tpu.memory_space<vmem>>, %arg7: memref<8x128xf32, #tpu.memory_space<vmem>>) attributes {dimension_semantics = [#tpu.dimension_semantics<parallel>, #tpu.dimension_semantics<arbitrary>], iteration_bounds = array<i64: 1, 1>, scalar_prefetch = 0 : i64, scratch_operands = 2 : i64, tpu.core_type = #tpu.core_type<tc>, window_params = [{transform_indices = @transform_0, window_bounds = array<i64: 32, 128>}, {transform_indices = @transform_1, window_bounds = array<i64: 32, 128>}, {transform_indices = @transform_2, window_bounds = array<i64: 8, 128>}, {transform_indices = @transform_3, window_bounds = array<i64: 8, 128>}]} {
    %c0_i32 = arith.constant 0 : i32
    %0 = arith.cmpi eq, %arg1, %c0_i32 : i32
    %1 = arith.extui %0 : i1 to i32
    %c0_i32_0 = arith.constant 0 : i32
    %2 = arith.cmpi ne, %1, %c0_i32_0 : i32
    scf.if %2 {
      %cst = arith.constant 0.000000e+00 : f32
      %16 = vector.broadcast %cst : f32 to vector<8x128xf32>
      %c0 = arith.constant 0 : index
      %c0_7 = arith.constant 0 : index
      %17 = vector.load %arg6[%c0, %c0_7] : memref<8x128xf32, #tpu.memory_space<vmem>>, vector<8x128xf32>
      tpu.vector_store %arg6[%c0, %c0_7], %16 {strides = array<i32>} : memref<8x128xf32, #tpu.memory_space<vmem>>, vector<8x128xf32>,
      %cst_8 = arith.constant 0.000000e+00 : f32
      %18 = vector.broadcast %cst_8 : f32 to vector<8x128xf32>
      %c0_9 = arith.constant 0 : index
      %c0_10 = arith.constant 0 : index
      %19 = vector.load %arg7[%c0_9, %c0_10] : memref<8x128xf32, #tpu.memory_space<vmem>>, vector<8x128xf32>
      tpu.vector_store %arg7[%c0_9, %c0_10], %18 {strides = array<i32>} : memref<8x128xf32, #tpu.memory_space<vmem>>, vector<8x128xf32>,
    } else {
    }
    %c1_i32 = arith.constant 1 : i32
    %3 = arith.muli %arg0, %c1_i32 : i32
    %4 = arith.addi %3, %arg1 : i32
    %c32_i32 = arith.constant 32 : i32
    %5 = arith.muli %4, %c32_i32 : i32
    %c16_i32 = arith.constant 16 : i32
    %6 = arith.subi %c16_i32, %5 : i32
    %c32_i32_1 = arith.constant 32 : i32
    %7 = arith.cmpi sge, %6, %c32_i32_1 : i32
    %8 = arith.extui %7 : i1 to i32
    %c0_i32_2 = arith.constant 0 : i32
    %9 = arith.cmpi ne, %8, %c0_i32_2 : i32
    scf.if %9 {
      %c0 = arith.constant 0 : index
      %c0_7 = arith.constant 0 : index
      %16 = vector.load %arg2[%c0, %c0_7] : memref<32x128xf32, #tpu.memory_space<vmem>>, vector<32x128xf32>
      %c0_8 = arith.constant 0 : index
      %c0_9 = arith.constant 0 : index
      %17 = vector.load %arg3[%c0_8, %c0_9] : memref<32x128xf32, #tpu.memory_space<vmem>>, vector<32x128xf32>
      %18 = vector.shape_cast %16 : vector<32x128xf32> to vector<4x8x128xf32>
      %19 = vector.shape_cast %17 : vector<32x128xf32> to vector<4x8x128xf32>
      %c0_10 = arith.constant 0 : index
      %c0_11 = arith.constant 0 : index
      %20 = vector.load %arg6[%c0_10, %c0_11] : memref<8x128xf32, #tpu.memory_space<vmem>>, vector<8x128xf32>
      %21 = arith.mulf %18, %19 : vector<4x8x128xf32>
      %cst = arith.constant dense<0.000000e+00> : vector<8x128xf32>
      %22 = vector.multi_reduction <add>, %21, %cst [0] : vector<4x8x128xf32> to vector<8x128xf32>
      %23 = arith.addf %20, %22 : vector<8x128xf32>
      %c0_12 = arith.constant 0 : index
      %c0_13 = arith.constant 0 : index
      %24 = vector.load %arg6[%c0_12, %c0_13] : memref<8x128xf32, #tpu.memory_space<vmem>>, vector<8x128xf32>
      tpu.vector_store %arg6[%c0_12, %c0_13], %23 {strides = array<i32>} : memref<8x128xf32, #tpu.memory_space<vmem>>, vector<8x128xf32>,
      %c0_14 = arith.constant 0 : index
      %c0_15 = arith.constant 0 : index
      %25 = vector.load %arg7[%c0_14, %c0_15] : memref<8x128xf32, #tpu.memory_space<vmem>>, vector<8x128xf32>
      %cst_16 = arith.constant dense<0.000000e+00> : vector<8x128xf32>
      %26 = vector.multi_reduction <add>, %18, %cst_16 [0] : vector<4x8x128xf32> to vector<8x128xf32>
      %cst_17 = arith.constant dense<0.000000e+00> : vector<8x128xf32>
      %27 = vector.multi_reduction <add>, %19, %cst_17 [0] : vector<4x8x128xf32> to vector<8x128xf32>
      %28 = arith.addf %26, %27 : vector<8x128xf32>
      %29 = arith.addf %25, %28 : vector<8x128xf32>
      %c0_18 = arith.constant 0 : index
      %c0_19 = arith.constant 0 : index
      %30 = vector.load %arg7[%c0_18, %c0_19] : memref<8x128xf32, #tpu.memory_space<vmem>>, vector<8x128xf32>
      tpu.vector_store %arg7[%c0_18, %c0_19], %29 {strides = array<i32>} : memref<8x128xf32, #tpu.memory_space<vmem>>, vector<8x128xf32>,
    } else {
    }
    %c32_i32_3 = arith.constant 32 : i32
    %10 = arith.cmpi slt, %6, %c32_i32_3 : i32
    %11 = arith.extui %10 : i1 to i32
    %c0_i32_4 = arith.constant 0 : i32
    %12 = arith.cmpi ne, %11, %c0_i32_4 : i32
    scf.if %12 {
      %16 = tpu.iota {dimensions = array<i32: 0>} : vector<32x128xi32>
      %17 = vector.broadcast %6 : i32 to vector<32x128xi32>
      %18 = arith.cmpi slt, %16, %17 : vector<32x128xi32>
      %c0 = arith.constant 0 : index
      %c0_7 = arith.constant 0 : index
      %19 = vector.load %arg2[%c0, %c0_7] : memref<32x128xf32, #tpu.memory_space<vmem>>, vector<32x128xf32>
      %cst = arith.constant 0.000000e+00 : f32
      %20 = vector.broadcast %cst : f32 to vector<32x128xf32>
      %21 = arith.select %18, %19, %20 : vector<32x128xi1>, vector<32x128xf32>
      %c0_8 = arith.constant 0 : index
      %c0_9 = arith.constant 0 : index
      %22 = vector.load %arg3[%c0_8, %c0_9] : memref<32x128xf32, #tpu.memory_space<vmem>>, vector<32x128xf32>
      %cst_10 = arith.constant 0.000000e+00 : f32
      %23 = vector.broadcast %cst_10 : f32 to vector<32x128xf32>
      %24 = arith.select %18, %22, %23 : vector<32x128xi1>, vector<32x128xf32>
      %25 = vector.shape_cast %21 : vector<32x128xf32> to vector<4x8x128xf32>
      %26 = vector.shape_cast %24 : vector<32x128xf32> to vector<4x8x128xf32>
      %c0_11 = arith.constant 0 : index
      %c0_12 = arith.constant 0 : index
      %27 = vector.load %arg6[%c0_11, %c0_12] : memref<8x128xf32, #tpu.memory_space<vmem>>, vector<8x128xf32>
      %28 = arith.mulf %25, %26 : vector<4x8x128xf32>
      %cst_13 = arith.constant dense<0.000000e+00> : vector<8x128xf32>
      %29 = vector.multi_reduction <add>, %28, %cst_13 [0] : vector<4x8x128xf32> to vector<8x128xf32>
      %30 = arith.addf %27, %29 : vector<8x128xf32>
      %c0_14 = arith.constant 0 : index
      %c0_15 = arith.constant 0 : index
      %31 = vector.load %arg6[%c0_14, %c0_15] : memref<8x128xf32, #tpu.memory_space<vmem>>, vector<8x128xf32>
      tpu.vector_store %arg6[%c0_14, %c0_15], %30 {strides = array<i32>} : memref<8x128xf32, #tpu.memory_space<vmem>>, vector<8x128xf32>,
      %c0_16 = arith.constant 0 : index
      %c0_17 = arith.constant 0 : index
      %32 = vector.load %arg7[%c0_16, %c0_17] : memref<8x128xf32, #tpu.memory_space<vmem>>, vector<8x128xf32>
      %cst_18 = arith.constant dense<0.000000e+00> : vector<8x128xf32>
      %33 = vector.multi_reduction <add>, %25, %cst_18 [0] : vector<4x8x128xf32> to vector<8x128xf32>
      %cst_19 = arith.constant dense<0.000000e+00> : vector<8x128xf32>
      %34 = vector.multi_reduction <add>, %26, %cst_19 [0] : vector<4x8x128xf32> to vector<8x128xf32>
      %35 = arith.addf %33, %34 : vector<8x128xf32>
      %36 = arith.addf %32, %35 : vector<8x128xf32>
      %c0_20 = arith.constant 0 : index
      %c0_21 = arith.constant 0 : index
      %37 = vector.load %arg7[%c0_20, %c0_21] : memref<8x128xf32, #tpu.memory_space<vmem>>, vector<8x128xf32>
      tpu.vector_store %arg7[%c0_20, %c0_21], %36 {strides = array<i32>} : memref<8x128xf32, #tpu.memory_space<vmem>>, vector<8x128xf32>,
    } else {
    }
    %c0_i32_5 = arith.constant 0 : i32
    %13 = arith.cmpi eq, %arg1, %c0_i32_5 : i32
    %14 = arith.extui %13 : i1 to i32
    %c0_i32_6 = arith.constant 0 : i32
    %15 = arith.cmpi ne, %14, %c0_i32_6 : i32
    scf.if %15 {
      %c0 = arith.constant 0 : index
      %c0_7 = arith.constant 0 : index
      %16 = vector.load %arg6[%c0, %c0_7] : memref<8x128xf32, #tpu.memory_space<vmem>>, vector<8x128xf32>
      %c0_8 = arith.constant 0 : index
      %c0_9 = arith.constant 0 : index
      %17 = vector.load %arg4[%c0_8, %c0_9] : memref<8x128xf32, #tpu.memory_space<vmem>>, vector<8x128xf32>
      tpu.vector_store %arg4[%c0_8, %c0_9], %16 {strides = array<i32>} : memref<8x128xf32, #tpu.memory_space<vmem>>, vector<8x128xf32>,
      %c0_10 = arith.constant 0 : index
      %c0_11 = arith.constant 0 : index
      %18 = vector.load %arg7[%c0_10, %c0_11] : memref<8x128xf32, #tpu.memory_space<vmem>>, vector<8x128xf32>
      %c0_12 = arith.constant 0 : index
      %c0_13 = arith.constant 0 : index
      %19 = vector.load %arg5[%c0_12, %c0_13] : memref<8x128xf32, #tpu.memory_space<vmem>>, vector<8x128xf32>
      tpu.vector_store %arg5[%c0_12, %c0_13], %18 {strides = array<i32>} : memref<8x128xf32, #tpu.memory_space<vmem>>, vector<8x128xf32>,
    } else {
    }
    return
  }
  func.func @transform_0(%arg0: i32, %arg1: i32) -> (i32, i32) {
    %c1_i32 = arith.constant 1 : i32
    %0 = arith.muli %arg0, %c1_i32 : i32
    %1 = arith.addi %0, %arg1 : i32
    %c0_i32 = arith.constant 0 : i32
    %2 = arith.minsi %1, %c0_i32 : i32
    %c0_i32_0 = arith.constant 0 : i32
    %c0_i32_1 = arith.constant 0 : i32
    return %2, %c0_i32_0 : i32, i32
  }
  func.func @transform_1(%arg0: i32, %arg1: i32) -> (i32, i32) {
    %c1_i32 = arith.constant 1 : i32
    %0 = arith.muli %arg0, %c1_i32 : i32
    %1 = arith.addi %0, %arg1 : i32
    %c0_i32 = arith.constant 0 : i32
    %2 = arith.minsi %1, %c0_i32 : i32
    %c0_i32_0 = arith.constant 0 : i32
    %c0_i32_1 = arith.constant 0 : i32
    return %2, %c0_i32_0 : i32, i32
  }
  func.func @transform_2(%arg0: i32, %arg1: i32) -> (i32, i32) {
    %c0_i32 = arith.constant 0 : i32
    %c0_i32_0 = arith.constant 0 : i32
    return %arg0, %c0_i32 : i32, i32
  }
  func.func @transform_3(%arg0: i32, %arg1: i32) -> (i32, i32) {
    %c0_i32 = arith.constant 0 : i32
    %c0_i32_0 = arith.constant 0 : i32
    return %arg0, %c0_i32 : i32, i32
  }
}

</mosaic_0001>

<bundles_post_ra>
// kernel: dice_loss.1
= control target key start
LH: loop header
LB: loop body
LE: loop exit
PB: predicated region body
PF: predicated region fallthrough
CT: control target
= control target key end

     0   :  { %s253_s0 = inlined_call_operand.vmem [shape: f32[16,128], index: 0, kind: input, shape index: {}]   ;;  %s254_s1 = inlined_call_operand.vmem [shape: f32[16,128], index: 1, kind: input, shape index: {}]   ;;  %s255_s2 = inlined_call_operand.vmem [shape: f32[8,128], index: 2, kind: output, shape index: {0}]   ;;  %s256_s3 = inlined_call_operand.vmem [shape: f32[8,128], index: 3, kind: output, shape index: {1}]  }
   0x1   :  { %v152_v0 = vld [vmem:[%s253_s0] sm:$0xff]  ;;  %v153_v1 = vld [vmem:[%s253_s0 + $0x8] sm:$0xff] }
   0x2   :  { %v160_v2 = vld [vmem:[%s254_s1] sm:$0xff]  ;;  %v161_v3 = vld [vmem:[%s254_s1 + $0x8] sm:$0xff]  ;;  %v179_v5 = vadd.f32 %v153_v1, %v152_v0 }
   0x3   :  { %v169_v4 = vmul.f32 %v160_v2, %v152_v0  ;;  %v170_v6 = vmul.f32 %v161_v3, %v153_v1  ;;  %v182_v7 = vadd.f32 %v161_v3, %v160_v2 }
   0x5   :  { %v173_v8 = vadd.f32 %v170_v6, %v169_v4  ;;  %v185_v9 = vadd.f32 %v182_v7, %v179_v5 }
   0x7   :  { %192 = vst [vmem:[%s255_s2] sm:$0xff] %v173_v8  ;;  %194 = vst [vmem:[%s256_s3] sm:$0xff] %v185_v9 }

</bundles_post_ra>
